<compile_context>
chip_gen: v5e
topology: v5e:2x2
jax: 0.10.0
libtpu: 0.0.40
codegen_flags: <defaults>
</compile_context>

<pallas_src>
import functools

import jax
import jax.numpy as jnp
from jax import lax
from jax.experimental import pallas as pl
from jax.experimental.pallas import tpu as pltpu


def _dit_block_kernel(
    x_ref, mods_ref,
    w_qkv_ref, b_qkv_ref,
    w_proj_ref, b_proj_ref,
    w_fc1_ref, b_fc1_ref,
    w_fc2_ref, b_fc2_ref,
    out_ref,
    *, num_heads: int, eps: float,
):
    bf16 = jnp.bfloat16
    x = x_ref[0].astype(jnp.float32)          # (N, C) residual stream, f32
    mods = mods_ref[0]                        # (6, C) f32 adaLN modulation vectors
    N, C = x.shape
    H = num_heads
    Dh = C // H
    scale = Dh ** (-0.5)

    shift_msa = mods[0:1, :]                  # (1, C)
    one_plus_scale_msa = 1.0 + mods[1:2, :]   # hoisted broadcast factor
    gate_msa = mods[2:3, :]
    shift_mlp = mods[3:4, :]
    one_plus_scale_mlp = 1.0 + mods[4:5, :]
    gate_mlp = mods[5:6, :]

    def layer_norm(h):                        # LayerNorm without affine, f32
        mu = jnp.mean(h, axis=-1, keepdims=True)
        var = jnp.mean(jnp.square(h - mu), axis=-1, keepdims=True)
        return (h - mu) * lax.rsqrt(var + eps)

    # ---------------------------- attention branch ----------------------------
    h1 = layer_norm(x) * one_plus_scale_msa + shift_msa          # (N, C) f32
    qkv = jnp.dot(h1.astype(bf16), w_qkv_ref[...],
                  preferred_element_type=jnp.float32) + b_qkv_ref[...]   # (N, 3C) f32

    w_proj = w_proj_ref[...]                                     # (C, C) bf16
    attn_acc = None                                              # (N, C) f32 accumulator
    for h in range(H):                                           # static unrolled head loop
        lo = h * Dh
        qh = (qkv[:, lo:lo + Dh] * scale).astype(bf16)           # pre-scale q (N, Dh)
        kh = qkv[:, C + lo:C + lo + Dh].astype(bf16)
        vh = qkv[:, 2 * C + lo:2 * C + lo + Dh].astype(bf16)

        # q @ k^T without materializing a transpose: contract the last dims.
        s = lax.dot_general(qh, kh, (((1,), (1,)), ((), ())),
                            preferred_element_type=jnp.float32)  # (N, N) f32
        s = s - jnp.max(s, axis=-1, keepdims=True)
        p = jnp.exp(s)
        p = p * pl.reciprocal(jnp.sum(p, axis=-1, keepdims=True), approx=True)

        oh = jnp.dot(p.astype(bf16), vh,
                     preferred_element_type=jnp.float32)         # (N, Dh) f32
        # Fused output projection: accumulate o_h @ W_proj[h*Dh:(h+1)*Dh, :]
        # (sublane-aligned row slice) instead of concatenate-then-dot.
        contrib = jnp.dot(oh.astype(bf16), w_proj[lo:lo + Dh, :],
                          preferred_element_type=jnp.float32)    # (N, C) f32
        attn_acc = contrib if attn_acc is None else attn_acc + contrib

    attn_out = attn_acc + b_proj_ref[...]
    x = x + gate_msa * attn_out                                  # gated residual

    # ------------------------------- MLP branch -------------------------------
    h2 = layer_norm(x) * one_plus_scale_mlp + shift_mlp
    hid = jnp.dot(h2.astype(bf16), w_fc1_ref[...],
                  preferred_element_type=jnp.float32) + b_fc1_ref[...]   # (N, Hm) f32
    hid = jax.nn.gelu(hid, approximate=True)                      # tanh-GELU, f32
    mlp_out = jnp.dot(hid.astype(bf16), w_fc2_ref[...],
                      preferred_element_type=jnp.float32) + b_fc2_ref[...]
    x = x + gate_mlp * mlp_out                                    # gated residual

    out_ref[0] = x.astype(out_ref.dtype)


def dit_block(x, c, params, *, num_heads: int, eps: float = 1e-6):
    B, N, C = x.shape
    assert C % num_heads == 0, "hidden_size must be divisible by num_heads"
    mlp_hidden = params["w_fc1"].shape[1]
    bf16 = jnp.bfloat16
    f32 = jnp.float32

    # ---- adaLN modulation hoisted to XLA (M=1 matmul; w_ada never enters VMEM) ----
    ada = jax.nn.silu(c.astype(f32)) @ params["w_ada"].astype(f32) + params["b_ada"].astype(f32)
    mods = ada.reshape(B, 6, C)                                   # (B, 6, C) f32

    # Weights as bf16 (MXU-native), biases in f32 (added post-accumulation).
    weight_args = [
        params["w_qkv"].astype(bf16), params["b_qkv"].astype(f32),
        params["w_proj"].astype(bf16), params["b_proj"].astype(f32),
        params["w_fc1"].astype(bf16), params["b_fc1"].astype(f32),
        params["w_fc2"].astype(bf16), params["b_fc2"].astype(f32),
    ]

    def full_spec(a):
        nd = a.ndim
        return pl.BlockSpec(a.shape, lambda b, _nd=nd: (0,) * _nd)

    in_specs = [
        pl.BlockSpec((1, N, C), lambda b: (b, 0, 0)),             # x: one batch slice
        pl.BlockSpec((1, 6, C), lambda b: (b, 0, 0)),             # modulation vectors
    ] + [full_spec(a) for a in weight_args]

    # Rough VMEM estimate: double-buffered weights/biases + f32 activation working set.
    wbytes = 2 * sum(int(a.size) * a.dtype.itemsize for a in weight_args)
    abytes = 4 * (8 * N * C + 3 * N * C + N * mlp_hidden + 2 * N * N)
    need = wbytes + abytes + (2 << 20)
    vmem_limit = None if need <= (32 << 20) else int(min(need, 64 << 20))

    kernel = functools.partial(_dit_block_kernel, num_heads=num_heads, eps=eps)
    return pl.pallas_call(
        kernel,
        out_shape=jax.ShapeDtypeStruct((B, N, C), x.dtype),
        grid=(B,),
        in_specs=in_specs,
        out_specs=pl.BlockSpec((1, N, C), lambda b: (b, 0, 0)),
        compiler_params=pltpu.CompilerParams(
            dimension_semantics=("parallel",),
            vmem_limit_bytes=vmem_limit,
        ),
    )(x, mods, *weight_args)


# ---------------------- pure-JAX reference for verification ----------------------
def dit_block_ref(x, c, params, *, num_heads: int, eps: float = 1e-6):
    B, N, C = x.shape
    H = num_heads
    Dh = C // H
    bf = jnp.bfloat16
    f32 = jnp.float32

    ada = jax.nn.silu(c) @ params["w_ada"] + params["b_ada"]
    sh_msa, sc_msa, g_msa, sh_mlp, sc_mlp, g_mlp = jnp.split(ada, 6, axis=1)

    def ln(h):
        mu = jnp.mean(h, -1, keepdims=True)
        var = jnp.mean((h - mu) ** 2, -1, keepdims=True)
        return (h - mu) * lax.rsqrt(var + eps)

    def mod(h, sh, sc):
        return h * (1.0 + sc[:, None, :]) + sh[:, None, :]

    h1 = mod(ln(x), sh_msa, sc_msa)
    qkv = jnp.einsum("bnc,cd->bnd", h1.astype(bf), params["w_qkv"].astype(bf),
                     preferred_element_type=f32) + params["b_qkv"]
    qkv = qkv.reshape(B, N, 3, H, Dh).transpose(2, 0, 3, 1, 4)
    q, k, v = qkv[0], qkv[1], qkv[2]                              # (B, H, N, Dh)
    s = jnp.einsum("bhqd,bhkd->bhqk", (q * Dh ** -0.5).astype(bf), k.astype(bf),
                   preferred_element_type=f32)
    p = jax.nn.softmax(s, axis=-1)
    o = jnp.einsum("bhqk,bhkd->bhqd", p.astype(bf), v.astype(bf),
                   preferred_element_type=f32)
    o = o.transpose(0, 2, 1, 3).reshape(B, N, C)
    o = jnp.einsum("bnc,cd->bnd", o.astype(bf), params["w_proj"].astype(bf),
                   preferred_element_type=f32) + params["b_proj"]
    x = x + g_msa[:, None, :] * o

    h2 = mod(ln(x), sh_mlp, sc_mlp)
    hid = jnp.einsum("bnc,cd->bnd", h2.astype(bf), params["w_fc1"].astype(bf),
                     preferred_element_type=f32) + params["b_fc1"]
    hid = jax.nn.gelu(hid, approximate=True)
    m = jnp.einsum("bnd,dc->bnc", hid.astype(bf), params["w_fc2"].astype(bf),
                   preferred_element_type=f32) + params["b_fc2"]
    return x + g_mlp[:, None, :] * m


def init_params(key, hidden_size, mlp_ratio=4.0):
    C = hidden_size
    Hm = int(hidden_size * mlp_ratio)
    ks = jax.random.split(key, 10)
    s = 0.02

    def rnd(k, shape):
        return jax.random.normal(k, shape, dtype=jnp.float32) * s

    return {
        # all linear weights stored as (in, out)
        "w_ada": rnd(ks[0], (C, 6 * C)),
        "b_ada": rnd(ks[1], (1, 6 * C)),
        "w_qkv": rnd(ks[2], (C, 3 * C)),
        "b_qkv": rnd(ks[3], (1, 3 * C)),
        "w_proj": rnd(ks[4], (C, C)),
        "b_proj": rnd(ks[5], (1, C)),
        "w_fc1": rnd(ks[6], (C, Hm)),
        "b_fc1": rnd(ks[7], (1, Hm)),
        "w_fc2": rnd(ks[8], (Hm, C)),
        "b_fc2": rnd(ks[9], (1, C)),
    }


if __name__ == "__main__":
    B, N, C = 2, 8, 32
    num_heads = 4

    key = jax.random.PRNGKey(0)
    kx, kc, kp = jax.random.split(key, 3)
    x = jax.random.normal(kx, (B, N, C), dtype=jnp.float32)
    c = jax.random.normal(kc, (B, C), dtype=jnp.float32)
    params = init_params(kp, C)

    out = dit_block(x, c, params, num_heads=num_heads)
    out = jax.block_until_ready(out)

    ref = dit_block_ref(x, c, params, num_heads=num_heads)
    assert out.shape == (B, N, C)
    max_err = float(jnp.max(jnp.abs(out - ref)))
    assert jnp.allclose(out, ref, atol=1e-2, rtol=1e-2), f"mismatch vs reference (max |err|={max_err})"

    print("KERNEL_OK")
</pallas_src>

<mosaic_0001>
module attributes {stable_mosaic.version = 11 : i64} {
  func.func @_dit_block_kernel(%arg0: i32, %arg1: memref<1x8x32xf32, #tpu.memory_space<vmem>>, %arg2: memref<1x6x32xf32, #tpu.memory_space<vmem>>, %arg3: memref<32x96xbf16, #tpu.memory_space<vmem>>, %arg4: memref<1x96xf32, #tpu.memory_space<vmem>>, %arg5: memref<32x32xbf16, #tpu.memory_space<vmem>>, %arg6: memref<1x32xf32, #tpu.memory_space<vmem>>, %arg7: memref<32x128xbf16, #tpu.memory_space<vmem>>, %arg8: memref<1x128xf32, #tpu.memory_space<vmem>>, %arg9: memref<128x32xbf16, #tpu.memory_space<vmem>>, %arg10: memref<1x32xf32, #tpu.memory_space<vmem>>, %arg11: memref<1x8x32xf32, #tpu.memory_space<vmem>>) attributes {dimension_semantics = [#tpu.dimension_semantics<parallel>], iteration_bounds = array<i64: 2>, scalar_prefetch = 0 : i64, scratch_operands = 0 : i64, tpu.core_type = #tpu.core_type<tc>, window_params = [{transform_indices = @transform_0, window_bounds = array<i64: 1, 8, 32>}, {transform_indices = @transform_1, window_bounds = array<i64: 1, 6, 32>}, {pipeline_mode = #tpu.pipeline_mode<synchronous>, transform_indices = @transform_2, window_bounds = array<i64: 32, 96>}, {pipeline_mode = #tpu.pipeline_mode<synchronous>, transform_indices = @transform_3, window_bounds = array<i64: 1, 96>}, {pipeline_mode = #tpu.pipeline_mode<synchronous>, transform_indices = @transform_4, window_bounds = array<i64: 32, 32>}, {pipeline_mode = #tpu.pipeline_mode<synchronous>, transform_indices = @transform_5, window_bounds = array<i64: 1, 32>}, {pipeline_mode = #tpu.pipeline_mode<synchronous>, transform_indices = @transform_6, window_bounds = array<i64: 32, 128>}, {pipeline_mode = #tpu.pipeline_mode<synchronous>, transform_indices = @transform_7, window_bounds = array<i64: 1, 128>}, {pipeline_mode = #tpu.pipeline_mode<synchronous>, transform_indices = @transform_8, window_bounds = array<i64: 128, 32>}, {pipeline_mode = #tpu.pipeline_mode<synchronous>, transform_indices = @transform_9, window_bounds = array<i64: 1, 32>}, {transform_indices = @transform_10, window_bounds = array<i64: 1, 8, 32>}]} {
    %c0 = arith.constant 0 : index
    %c0_0 = arith.constant 0 : index
    %c0_1 = arith.constant 0 : index
    %0 = vector.load %arg1[%c0, %c0_0, %c0_1] : memref<1x8x32xf32, #tpu.memory_space<vmem>>, vector<1x8x32xf32>
    %1 = vector.shape_cast %0 : vector<1x8x32xf32> to vector<8x32xf32>
    %c0_2 = arith.constant 0 : index
    %c0_3 = arith.constant 0 : index
    %c0_4 = arith.constant 0 : index
    %2 = vector.load %arg2[%c0_2, %c0_3, %c0_4] : memref<1x6x32xf32, #tpu.memory_space<vmem>>, vector<1x6x32xf32>
    %3 = vector.shape_cast %2 : vector<1x6x32xf32> to vector<6x32xf32>
    %4 = vector.extract_strided_slice %3 {offsets = [0, 0], sizes = [1, 32], strides = [1, 1]} : vector<6x32xf32> to vector<1x32xf32>
    %5 = vector.extract_strided_slice %3 {offsets = [1, 0], sizes = [1, 32], strides = [1, 1]} : vector<6x32xf32> to vector<1x32xf32>
    %cst = arith.constant 1.000000e+00 : f32
    %6 = vector.broadcast %cst : f32 to vector<1x32xf32>
    %7 = arith.addf %6, %5 : vector<1x32xf32>
    %8 = vector.extract_strided_slice %3 {offsets = [2, 0], sizes = [1, 32], strides = [1, 1]} : vector<6x32xf32> to vector<1x32xf32>
    %9 = vector.extract_strided_slice %3 {offsets = [3, 0], sizes = [1, 32], strides = [1, 1]} : vector<6x32xf32> to vector<1x32xf32>
    %10 = vector.extract_strided_slice %3 {offsets = [4, 0], sizes = [1, 32], strides = [1, 1]} : vector<6x32xf32> to vector<1x32xf32>
    %cst_5 = arith.constant 1.000000e+00 : f32
    %11 = vector.broadcast %cst_5 : f32 to vector<1x32xf32>
    %12 = arith.addf %11, %10 : vector<1x32xf32>
    %13 = vector.extract_strided_slice %3 {offsets = [5, 0], sizes = [1, 32], strides = [1, 1]} : vector<6x32xf32> to vector<1x32xf32>
    %cst_6 = arith.constant dense<0.000000e+00> : vector<8xf32>
    %14 = vector.multi_reduction <add>, %1, %cst_6 [1] : vector<8x32xf32> to vector<8xf32>
    %15 = vector.shape_cast %14 : vector<8xf32> to vector<8x1xf32>
    %cst_7 = arith.constant 3.200000e+01 : f32
    %16 = vector.broadcast %cst_7 : f32 to vector<8x1xf32>
    %17 = arith.divf %15, %16 : vector<8x1xf32>
    %18 = vector.broadcast %17 : vector<8x1xf32> to vector<8x32xf32>
    %19 = arith.subf %1, %18 : vector<8x32xf32>
    %20 = arith.mulf %19, %19 : vector<8x32xf32>
    %cst_8 = arith.constant dense<0.000000e+00> : vector<8xf32>
    %21 = vector.multi_reduction <add>, %20, %cst_8 [1] : vector<8x32xf32> to vector<8xf32>
    %22 = vector.shape_cast %21 : vector<8xf32> to vector<8x1xf32>
    %cst_9 = arith.constant 3.200000e+01 : f32
    %23 = vector.broadcast %cst_9 : f32 to vector<8x1xf32>
    %24 = arith.divf %22, %23 : vector<8x1xf32>
    %25 = vector.broadcast %17 : vector<8x1xf32> to vector<8x32xf32>
    %26 = arith.subf %1, %25 : vector<8x32xf32>
    %cst_10 = arith.constant 9.99999997E-7 : f32
    %27 = vector.broadcast %cst_10 : f32 to vector<8x1xf32>
    %28 = arith.addf %24, %27 : vector<8x1xf32>
    %29 = math.rsqrt %28 : vector<8x1xf32>
    %30 = vector.broadcast %29 : vector<8x1xf32> to vector<8x32xf32>
    %31 = arith.mulf %26, %30 : vector<8x32xf32>
    %32 = vector.broadcast %7 : vector<1x32xf32> to vector<8x32xf32>
    %33 = arith.mulf %31, %32 : vector<8x32xf32>
    %34 = vector.broadcast %4 : vector<1x32xf32> to vector<8x32xf32>
    %35 = arith.addf %33, %34 : vector<8x32xf32>
    %36 = arith.truncf %35 : vector<8x32xf32> to vector<8x32xbf16>
    %c0_11 = arith.constant 0 : index
    %c0_12 = arith.constant 0 : index
    %37 = vector.load %arg3[%c0_11, %c0_12] : memref<32x96xbf16, #tpu.memory_space<vmem>>, vector<32x96xbf16>
    %cst_13 = arith.constant dense<0.000000e+00> : vector<8x96xf32>
    %38 = tpu.matmul %36, %37, %cst_13 {dimension_numbers = #tpu.dot_dimension_numbers<[1], [0], [0], [1], [0, 0, 1, 1], [], []>} : vector<8x32xbf16>, vector<32x96xbf16>, vector<8x96xf32> -> vector<8x96xf32>
    %c0_14 = arith.constant 0 : index
    %c0_15 = arith.constant 0 : index
    %39 = vector.load %arg4[%c0_14, %c0_15] : memref<1x96xf32, #tpu.memory_space<vmem>>, vector<1x96xf32>
    %40 = vector.broadcast %39 : vector<1x96xf32> to vector<8x96xf32>
    %41 = arith.addf %38, %40 : vector<8x96xf32>
    %c0_16 = arith.constant 0 : index
    %c0_17 = arith.constant 0 : index
    %42 = vector.load %arg5[%c0_16, %c0_17] : memref<32x32xbf16, #tpu.memory_space<vmem>>, vector<32x32xbf16>
    %43 = vector.extract_strided_slice %41 {offsets = [0, 0], sizes = [8, 8], strides = [1, 1]} : vector<8x96xf32> to vector<8x8xf32>
    %cst_18 = arith.constant 0.353553385 : f32
    %44 = vector.broadcast %cst_18 : f32 to vector<8x8xf32>
    %45 = arith.mulf %43, %44 : vector<8x8xf32>
    %46 = arith.truncf %45 : vector<8x8xf32> to vector<8x8xbf16>
    %47 = vector.extract_strided_slice %41 {offsets = [0, 32], sizes = [8, 8], strides = [1, 1]} : vector<8x96xf32> to vector<8x8xf32>
    %48 = arith.truncf %47 : vector<8x8xf32> to vector<8x8xbf16>
    %49 = vector.extract_strided_slice %41 {offsets = [0, 64], sizes = [8, 8], strides = [1, 1]} : vector<8x96xf32> to vector<8x8xf32>
    %50 = arith.truncf %49 : vector<8x8xf32> to vector<8x8xbf16>
    %cst_19 = arith.constant dense<0.000000e+00> : vector<8x8xf32>
    %51 = tpu.matmul %46, %48, %cst_19 {dimension_numbers = #tpu.dot_dimension_numbers<[1], [1], [0], [0], [0, 0, 1, 0], [], []>} : vector<8x8xbf16>, vector<8x8xbf16>, vector<8x8xf32> -> vector<8x8xf32>
    %cst_20 = arith.constant dense<0xFF800000> : vector<8xf32>
    %52 = vector.multi_reduction <maximumf>, %51, %cst_20 [1] : vector<8x8xf32> to vector<8xf32>
    %53 = vector.shape_cast %52 : vector<8xf32> to vector<8x1xf32>
    %54 = vector.broadcast %53 : vector<8x1xf32> to vector<8x8xf32>
    %55 = arith.subf %51, %54 : vector<8x8xf32>
    %56 = math.exp %55 : vector<8x8xf32>
    %cst_21 = arith.constant dense<0.000000e+00> : vector<8xf32>
    %57 = vector.multi_reduction <add>, %56, %cst_21 [1] : vector<8x8xf32> to vector<8xf32>
    %58 = vector.shape_cast %57 : vector<8xf32> to vector<8x1xf32>
    %59 = tpu.reciprocal %58 {approx = true} : vector<8x1xf32> -> vector<8x1xf32>
    %60 = vector.broadcast %59 : vector<8x1xf32> to vector<8x8xf32>
    %61 = arith.mulf %56, %60 : vector<8x8xf32>
    %62 = arith.truncf %61 : vector<8x8xf32> to vector<8x8xbf16>
    %cst_22 = arith.constant dense<0.000000e+00> : vector<8x8xf32>
    %63 = tpu.matmul %62, %50, %cst_22 {dimension_numbers = #tpu.dot_dimension_numbers<[1], [0], [0], [1], [0, 0, 1, 1], [], []>} : vector<8x8xbf16>, vector<8x8xbf16>, vector<8x8xf32> -> vector<8x8xf32>
    %64 = arith.truncf %63 : vector<8x8xf32> to vector<8x8xbf16>
    %65 = vector.extract_strided_slice %42 {offsets = [0, 0], sizes = [8, 32], strides = [1, 1]} : vector<32x32xbf16> to vector<8x32xbf16>
    %cst_23 = arith.constant dense<0.000000e+00> : vector<8x32xf32>
    %66 = tpu.matmul %64, %65, %cst_23 {dimension_numbers = #tpu.dot_dimension_numbers<[1], [0], [0], [1], [0, 0, 1, 1], [], []>} : vector<8x8xbf16>, vector<8x32xbf16>, vector<8x32xf32> -> vector<8x32xf32>
    %67 = vector.extract_strided_slice %41 {offsets = [0, 8], sizes = [8, 8], strides = [1, 1]} : vector<8x96xf32> to vector<8x8xf32>
    %cst_24 = arith.constant 0.353553385 : f32
    %68 = vector.broadcast %cst_24 : f32 to vector<8x8xf32>
    %69 = arith.mulf %67, %68 : vector<8x8xf32>
    %70 = arith.truncf %69 : vector<8x8xf32> to vector<8x8xbf16>
    %71 = vector.extract_strided_slice %41 {offsets = [0, 40], sizes = [8, 8], strides = [1, 1]} : vector<8x96xf32> to vector<8x8xf32>
    %72 = arith.truncf %71 : vector<8x8xf32> to vector<8x8xbf16>
    %73 = vector.extract_strided_slice %41 {offsets = [0, 72], sizes = [8, 8], strides = [1, 1]} : vector<8x96xf32> to vector<8x8xf32>
    %74 = arith.truncf %73 : vector<8x8xf32> to vector<8x8xbf16>
    %cst_25 = arith.constant dense<0.000000e+00> : vector<8x8xf32>
    %75 = tpu.matmul %70, %72, %cst_25 {dimension_numbers = #tpu.dot_dimension_numbers<[1], [1], [0], [0], [0, 0, 1, 0], [], []>} : vector<8x8xbf16>, vector<8x8xbf16>, vector<8x8xf32> -> vector<8x8xf32>
    %cst_26 = arith.constant dense<0xFF800000> : vector<8xf32>
    %76 = vector.multi_reduction <maximumf>, %75, %cst_26 [1] : vector<8x8xf32> to vector<8xf32>
    %77 = vector.shape_cast %76 : vector<8xf32> to vector<8x1xf32>
    %78 = vector.broadcast %77 : vector<8x1xf32> to vector<8x8xf32>
    %79 = arith.subf %75, %78 : vector<8x8xf32>
    %80 = math.exp %79 : vector<8x8xf32>
    %cst_27 = arith.constant dense<0.000000e+00> : vector<8xf32>
    %81 = vector.multi_reduction <add>, %80, %cst_27 [1] : vector<8x8xf32> to vector<8xf32>
    %82 = vector.shape_cast %81 : vector<8xf32> to vector<8x1xf32>
    %83 = tpu.reciprocal %82 {approx = true} : vector<8x1xf32> -> vector<8x1xf32>
    %84 = vector.broadcast %83 : vector<8x1xf32> to vector<8x8xf32>
    %85 = arith.mulf %80, %84 : vector<8x8xf32>
    %86 = arith.truncf %85 : vector<8x8xf32> to vector<8x8xbf16>
    %cst_28 = arith.constant dense<0.000000e+00> : vector<8x8xf32>
    %87 = tpu.matmul %86, %74, %cst_28 {dimension_numbers = #tpu.dot_dimension_numbers<[1], [0], [0], [1], [0, 0, 1, 1], [], []>} : vector<8x8xbf16>, vector<8x8xbf16>, vector<8x8xf32> -> vector<8x8xf32>
    %88 = arith.truncf %87 : vector<8x8xf32> to vector<8x8xbf16>
    %89 = vector.extract_strided_slice %42 {offsets = [8, 0], sizes = [8, 32], strides = [1, 1]} : vector<32x32xbf16> to vector<8x32xbf16>
    %cst_29 = arith.constant dense<0.000000e+00> : vector<8x32xf32>
    %90 = tpu.matmul %88, %89, %cst_29 {dimension_numbers = #tpu.dot_dimension_numbers<[1], [0], [0], [1], [0, 0, 1, 1], [], []>} : vector<8x8xbf16>, vector<8x32xbf16>, vector<8x32xf32> -> vector<8x32xf32>
    %91 = arith.addf %66, %90 : vector<8x32xf32>
    %92 = vector.extract_strided_slice %41 {offsets = [0, 16], sizes = [8, 8], strides = [1, 1]} : vector<8x96xf32> to vector<8x8xf32>
    %cst_30 = arith.constant 0.353553385 : f32
    %93 = vector.broadcast %cst_30 : f32 to vector<8x8xf32>
    %94 = arith.mulf %92, %93 : vector<8x8xf32>
    %95 = arith.truncf %94 : vector<8x8xf32> to vector<8x8xbf16>
    %96 = vector.extract_strided_slice %41 {offsets = [0, 48], sizes = [8, 8], strides = [1, 1]} : vector<8x96xf32> to vector<8x8xf32>
    %97 = arith.truncf %96 : vector<8x8xf32> to vector<8x8xbf16>
    %98 = vector.extract_strided_slice %41 {offsets = [0, 80], sizes = [8, 8], strides = [1, 1]} : vector<8x96xf32> to vector<8x8xf32>
    %99 = arith.truncf %98 : vector<8x8xf32> to vector<8x8xbf16>
    %cst_31 = arith.constant dense<0.000000e+00> : vector<8x8xf32>
    %100 = tpu.matmul %95, %97, %cst_31 {dimension_numbers = #tpu.dot_dimension_numbers<[1], [1], [0], [0], [0, 0, 1, 0], [], []>} : vector<8x8xbf16>, vector<8x8xbf16>, vector<8x8xf32> -> vector<8x8xf32>
    %cst_32 = arith.constant dense<0xFF800000> : vector<8xf32>
    %101 = vector.multi_reduction <maximumf>, %100, %cst_32 [1] : vector<8x8xf32> to vector<8xf32>
    %102 = vector.shape_cast %101 : vector<8xf32> to vector<8x1xf32>
    %103 = vector.broadcast %102 : vector<8x1xf32> to vector<8x8xf32>
    %104 = arith.subf %100, %103 : vector<8x8xf32>
    %105 = math.exp %104 : vector<8x8xf32>
    %cst_33 = arith.constant dense<0.000000e+00> : vector<8xf32>
    %106 = vector.multi_reduction <add>, %105, %cst_33 [1] : vector<8x8xf32> to vector<8xf32>
    %107 = vector.shape_cast %106 : vector<8xf32> to vector<8x1xf32>
    %108 = tpu.reciprocal %107 {approx = true} : vector<8x1xf32> -> vector<8x1xf32>
    %109 = vector.broadcast %108 : vector<8x1xf32> to vector<8x8xf32>
    %110 = arith.mulf %105, %109 : vector<8x8xf32>
    %111 = arith.truncf %110 : vector<8x8xf32> to vector<8x8xbf16>
    %cst_34 = arith.constant dense<0.000000e+00> : vector<8x8xf32>
    %112 = tpu.matmul %111, %99, %cst_34 {dimension_numbers = #tpu.dot_dimension_numbers<[1], [0], [0], [1], [0, 0, 1, 1], [], []>} : vector<8x8xbf16>, vector<8x8xbf16>, vector<8x8xf32> -> vector<8x8xf32>
    %113 = arith.truncf %112 : vector<8x8xf32> to vector<8x8xbf16>
    %114 = vector.extract_strided_slice %42 {offsets = [16, 0], sizes = [8, 32], strides = [1, 1]} : vector<32x32xbf16> to vector<8x32xbf16>
    %cst_35 = arith.constant dense<0.000000e+00> : vector<8x32xf32>
    %115 = tpu.matmul %113, %114, %cst_35 {dimension_numbers = #tpu.dot_dimension_numbers<[1], [0], [0], [1], [0, 0, 1, 1], [], []>} : vector<8x8xbf16>, vector<8x32xbf16>, vector<8x32xf32> -> vector<8x32xf32>
    %116 = arith.addf %91, %115 : vector<8x32xf32>
    %117 = vector.extract_strided_slice %41 {offsets = [0, 24], sizes = [8, 8], strides = [1, 1]} : vector<8x96xf32> to vector<8x8xf32>
    %cst_36 = arith.constant 0.353553385 : f32
    %118 = vector.broadcast %cst_36 : f32 to vector<8x8xf32>
    %119 = arith.mulf %117, %118 : vector<8x8xf32>
    %120 = arith.truncf %119 : vector<8x8xf32> to vector<8x8xbf16>
    %121 = vector.extract_strided_slice %41 {offsets = [0, 56], sizes = [8, 8], strides = [1, 1]} : vector<8x96xf32> to vector<8x8xf32>
    %122 = arith.truncf %121 : vector<8x8xf32> to vector<8x8xbf16>
    %123 = vector.extract_strided_slice %41 {offsets = [0, 88], sizes = [8, 8], strides = [1, 1]} : vector<8x96xf32> to vector<8x8xf32>
    %124 = arith.truncf %123 : vector<8x8xf32> to vector<8x8xbf16>
    %cst_37 = arith.constant dense<0.000000e+00> : vector<8x8xf32>
    %125 = tpu.matmul %120, %122, %cst_37 {dimension_numbers = #tpu.dot_dimension_numbers<[1], [1], [0], [0], [0, 0, 1, 0], [], []>} : vector<8x8xbf16>, vector<8x8xbf16>, vector<8x8xf32> -> vector<8x8xf32>
    %cst_38 = arith.constant dense<0xFF800000> : vector<8xf32>
    %126 = vector.multi_reduction <maximumf>, %125, %cst_38 [1] : vector<8x8xf32> to vector<8xf32>
    %127 = vector.shape_cast %126 : vector<8xf32> to vector<8x1xf32>
    %128 = vector.broadcast %127 : vector<8x1xf32> to vector<8x8xf32>
    %129 = arith.subf %125, %128 : vector<8x8xf32>
    %130 = math.exp %129 : vector<8x8xf32>
    %cst_39 = arith.constant dense<0.000000e+00> : vector<8xf32>
    %131 = vector.multi_reduction <add>, %130, %cst_39 [1] : vector<8x8xf32> to vector<8xf32>
    %132 = vector.shape_cast %131 : vector<8xf32> to vector<8x1xf32>
    %133 = tpu.reciprocal %132 {approx = true} : vector<8x1xf32> -> vector<8x1xf32>
    %134 = vector.broadcast %133 : vector<8x1xf32> to vector<8x8xf32>
    %135 = arith.mulf %130, %134 : vector<8x8xf32>
    %136 = arith.truncf %135 : vector<8x8xf32> to vector<8x8xbf16>
    %cst_40 = arith.constant dense<0.000000e+00> : vector<8x8xf32>
    %137 = tpu.matmul %136, %124, %cst_40 {dimension_numbers = #tpu.dot_dimension_numbers<[1], [0], [0], [1], [0, 0, 1, 1], [], []>} : vector<8x8xbf16>, vector<8x8xbf16>, vector<8x8xf32> -> vector<8x8xf32>
    %138 = arith.truncf %137 : vector<8x8xf32> to vector<8x8xbf16>
    %139 = vector.extract_strided_slice %42 {offsets = [24, 0], sizes = [8, 32], strides = [1, 1]} : vector<32x32xbf16> to vector<8x32xbf16>
    %cst_41 = arith.constant dense<0.000000e+00> : vector<8x32xf32>
    %140 = tpu.matmul %138, %139, %cst_41 {dimension_numbers = #tpu.dot_dimension_numbers<[1], [0], [0], [1], [0, 0, 1, 1], [], []>} : vector<8x8xbf16>, vector<8x32xbf16>, vector<8x32xf32> -> vector<8x32xf32>
    %141 = arith.addf %116, %140 : vector<8x32xf32>
    %c0_42 = arith.constant 0 : index
    %c0_43 = arith.constant 0 : index
    %142 = vector.load %arg6[%c0_42, %c0_43] : memref<1x32xf32, #tpu.memory_space<vmem>>, vector<1x32xf32>
    %143 = vector.broadcast %142 : vector<1x32xf32> to vector<8x32xf32>
    %144 = arith.addf %141, %143 : vector<8x32xf32>
    %145 = vector.broadcast %8 : vector<1x32xf32> to vector<8x32xf32>
    %146 = arith.mulf %145, %144 : vector<8x32xf32>
    %147 = arith.addf %1, %146 : vector<8x32xf32>
    %cst_44 = arith.constant dense<0.000000e+00> : vector<8xf32>
    %148 = vector.multi_reduction <add>, %147, %cst_44 [1] : vector<8x32xf32> to vector<8xf32>
    %149 = vector.shape_cast %148 : vector<8xf32> to vector<8x1xf32>
    %cst_45 = arith.constant 3.200000e+01 : f32
    %150 = vector.broadcast %cst_45 : f32 to vector<8x1xf32>
    %151 = arith.divf %149, %150 : vector<8x1xf32>
    %152 = vector.broadcast %151 : vector<8x1xf32> to vector<8x32xf32>
    %153 = arith.subf %147, %152 : vector<8x32xf32>
    %154 = arith.mulf %153, %153 : vector<8x32xf32>
    %cst_46 = arith.constant dense<0.000000e+00> : vector<8xf32>
    %155 = vector.multi_reduction <add>, %154, %cst_46 [1] : vector<8x32xf32> to vector<8xf32>
    %156 = vector.shape_cast %155 : vector<8xf32> to vector<8x1xf32>
    %cst_47 = arith.constant 3.200000e+01 : f32
    %157 = vector.broadcast %cst_47 : f32 to vector<8x1xf32>
    %158 = arith.divf %156, %157 : vector<8x1xf32>
    %159 = vector.broadcast %151 : vector<8x1xf32> to vector<8x32xf32>
    %160 = arith.subf %147, %159 : vector<8x32xf32>
    %cst_48 = arith.constant 9.99999997E-7 : f32
    %161 = vector.broadcast %cst_48 : f32 to vector<8x1xf32>
    %162 = arith.addf %158, %161 : vector<8x1xf32>
    %163 = math.rsqrt %162 : vector<8x1xf32>
    %164 = vector.broadcast %163 : vector<8x1xf32> to vector<8x32xf32>
    %165 = arith.mulf %160, %164 : vector<8x32xf32>
    %166 = vector.broadcast %12 : vector<1x32xf32> to vector<8x32xf32>
    %167 = arith.mulf %165, %166 : vector<8x32xf32>
    %168 = vector.broadcast %9 : vector<1x32xf32> to vector<8x32xf32>
    %169 = arith.addf %167, %168 : vector<8x32xf32>
    %170 = arith.truncf %169 : vector<8x32xf32> to vector<8x32xbf16>
    %c0_49 = arith.constant 0 : index
    %c0_50 = arith.constant 0 : index
    %171 = vector.load %arg7[%c0_49, %c0_50] : memref<32x128xbf16, #tpu.memory_space<vmem>>, vector<32x128xbf16>
    %cst_51 = arith.constant dense<0.000000e+00> : vector<8x128xf32>
    %172 = tpu.matmul %170, %171, %cst_51 {dimension_numbers = #tpu.dot_dimension_numbers<[1], [0], [0], [1], [0, 0, 1, 1], [], []>} : vector<8x32xbf16>, vector<32x128xbf16>, vector<8x128xf32> -> vector<8x128xf32>
    %c0_52 = arith.constant 0 : index
    %c0_53 = arith.constant 0 : index
    %173 = vector.load %arg8[%c0_52, %c0_53] : memref<1x128xf32, #tpu.memory_space<vmem>>, vector<1x128xf32>
    %174 = vector.broadcast %173 : vector<1x128xf32> to vector<8x128xf32>
    %175 = arith.addf %172, %174 : vector<8x128xf32>
    %176 = arith.mulf %175, %175 : vector<8x128xf32>
    %177 = arith.mulf %175, %176 : vector<8x128xf32>
    %cst_54 = arith.constant 4.471500e-02 : f32
    %178 = vector.broadcast %cst_54 : f32 to vector<8x128xf32>
    %179 = arith.mulf %178, %177 : vector<8x128xf32>
    %180 = arith.addf %175, %179 : vector<8x128xf32>
    %cst_55 = arith.constant 0.797884583 : f32
    %181 = vector.broadcast %cst_55 : f32 to vector<8x128xf32>
    %182 = arith.mulf %181, %180 : vector<8x128xf32>
    %183 = math.tanh %182 : vector<8x128xf32>
    %cst_56 = arith.constant 1.000000e+00 : f32
    %184 = vector.broadcast %cst_56 : f32 to vector<8x128xf32>
    %185 = arith.addf %184, %183 : vector<8x128xf32>
    %cst_57 = arith.constant 5.000000e-01 : f32
    %186 = vector.broadcast %cst_57 : f32 to vector<8x128xf32>
    %187 = arith.mulf %186, %185 : vector<8x128xf32>
    %188 = arith.mulf %175, %187 : vector<8x128xf32>
    %189 = arith.truncf %188 : vector<8x128xf32> to vector<8x128xbf16>
    %c0_58 = arith.constant 0 : index
    %c0_59 = arith.constant 0 : index
    %190 = vector.load %arg9[%c0_58, %c0_59] : memref<128x32xbf16, #tpu.memory_space<vmem>>, vector<128x32xbf16>
    %cst_60 = arith.constant dense<0.000000e+00> : vector<8x32xf32>
    %191 = tpu.matmul %189, %190, %cst_60 {dimension_numbers = #tpu.dot_dimension_numbers<[1], [0], [0], [1], [0, 0, 1, 1], [], []>} : vector<8x128xbf16>, vector<128x32xbf16>, vector<8x32xf32> -> vector<8x32xf32>
    %c0_61 = arith.constant 0 : index
    %c0_62 = arith.constant 0 : index
    %192 = vector.load %arg10[%c0_61, %c0_62] : memref<1x32xf32, #tpu.memory_space<vmem>>, vector<1x32xf32>
    %193 = vector.broadcast %192 : vector<1x32xf32> to vector<8x32xf32>
    %194 = arith.addf %191, %193 : vector<8x32xf32>
    %195 = vector.broadcast %13 : vector<1x32xf32> to vector<8x32xf32>
    %196 = arith.mulf %195, %194 : vector<8x32xf32>
    %197 = arith.addf %147, %196 : vector<8x32xf32>
    %c0_63 = arith.constant 0 : index
    %c0_64 = arith.constant 0 : index
    %c0_65 = arith.constant 0 : index
    %198 = vector.load %arg11[%c0_63, %c0_64, %c0_65] : memref<1x8x32xf32, #tpu.memory_space<vmem>>, vector<1x8x32xf32>
    %199 = vector.shape_cast %198 : vector<1x8x32xf32> to vector<8x32xf32>
    %200 = vector.shape_cast %197 : vector<8x32xf32> to vector<1x8x32xf32>
    tpu.vector_store %arg11[%c0_63, %c0_64, %c0_65], %200 {strides = array<i32>} : memref<1x8x32xf32, #tpu.memory_space<vmem>>, vector<1x8x32xf32>,
    return
  }
  func.func @transform_0(%arg0: i32) -> (i32, i32, i32) {
    %c0_i32 = arith.constant 0 : i32
    %c0_i32_0 = arith.constant 0 : i32
    %c0_i32_1 = arith.constant 0 : i32
    return %arg0, %c0_i32, %c0_i32_0 : i32, i32, i32
  }
  func.func @transform_1(%arg0: i32) -> (i32, i32, i32) {
    %c0_i32 = arith.constant 0 : i32
    %c0_i32_0 = arith.constant 0 : i32
    %c0_i32_1 = arith.constant 0 : i32
    return %arg0, %c0_i32, %c0_i32_0 : i32, i32, i32
  }
  func.func @transform_2(%arg0: i32) -> (i32, i32) {
    %c0_i32 = arith.constant 0 : i32
    %c0_i32_0 = arith.constant 0 : i32
    %c0_i32_1 = arith.constant 0 : i32
    return %c0_i32, %c0_i32_0 : i32, i32
  }
  func.func @transform_3(%arg0: i32) -> (i32, i32) {
    %c0_i32 = arith.constant 0 : i32
    %c0_i32_0 = arith.constant 0 : i32
    %c0_i32_1 = arith.constant 0 : i32
    return %c0_i32, %c0_i32_0 : i32, i32
  }
  func.func @transform_4(%arg0: i32) -> (i32, i32) {
    %c0_i32 = arith.constant 0 : i32
    %c0_i32_0 = arith.constant 0 : i32
    %c0_i32_1 = arith.constant 0 : i32
    return %c0_i32, %c0_i32_0 : i32, i32
  }
  func.func @transform_5(%arg0: i32) -> (i32, i32) {
    %c0_i32 = arith.constant 0 : i32
    %c0_i32_0 = arith.constant 0 : i32
    %c0_i32_1 = arith.constant 0 : i32
    return %c0_i32, %c0_i32_0 : i32, i32
  }
  func.func @transform_6(%arg0: i32) -> (i32, i32) {
    %c0_i32 = arith.constant 0 : i32
    %c0_i32_0 = arith.constant 0 : i32
    %c0_i32_1 = arith.constant 0 : i32
    return %c0_i32, %c0_i32_0 : i32, i32
  }
  func.func @transform_7(%arg0: i32) -> (i32, i32) {
    %c0_i32 = arith.constant 0 : i32
    %c0_i32_0 = arith.constant 0 : i32
    %c0_i32_1 = arith.constant 0 : i32
    return %c0_i32, %c0_i32_0 : i32, i32
  }
  func.func @transform_8(%arg0: i32) -> (i32, i32) {
    %c0_i32 = arith.constant 0 : i32
    %c0_i32_0 = arith.constant 0 : i32
    %c0_i32_1 = arith.constant 0 : i32
    return %c0_i32, %c0_i32_0 : i32, i32
  }
  func.func @transform_9(%arg0: i32) -> (i32, i32) {
    %c0_i32 = arith.constant 0 : i32
    %c0_i32_0 = arith.constant 0 : i32
    %c0_i32_1 = arith.constant 0 : i32
    return %c0_i32, %c0_i32_0 : i32, i32
  }
  func.func @transform_10(%arg0: i32) -> (i32, i32, i32) {
    %c0_i32 = arith.constant 0 : i32
    %c0_i32_0 = arith.constant 0 : i32
    %c0_i32_1 = arith.constant 0 : i32
    return %arg0, %c0_i32, %c0_i32_0 : i32, i32, i32
  }
}

</mosaic_0001>

<bundles_post_ra>
// kernel: tpu_custom_call.1
= control target key start
LH: loop header
LB: loop body
LE: loop exit
PB: predicated region body
PF: predicated region fallthrough
CT: control target
= control target key end

     0   :  { %15 = vsyncpa [#allocation3], 0  ;;  %s1544_s0 = inlined_call_operand.vmem [shape: f32[2,8,32], index: 0, kind: input, shape index: {}]   ;;  %s1545_s1 = inlined_call_operand.vmem [shape: f32[2,6,32], index: 1, kind: input, shape index: {}]   ;;  %s1546_s2 = inlined_call_operand.vmem [shape: bf16[32,96], index: 2, kind: input, shape index: {}]   ;;  %s1547_s3 = inlined_call_operand.vmem [shape: f32[1,96], index: 3, kind: input, shape index: {}]   ;;  %s1548_s4 = inlined_call_operand.vmem [shape: bf16[32,32], index: 4, kind: input, shape index: {}]   ;;  %s1549_s5 = inlined_call_operand.vmem [shape: f32[1,32], index: 5, kind: input, shape index: {}]   ;;  %s1550_s6 = inlined_call_operand.vmem [shape: bf16[32,128], index: 6, kind: input, shape index: {}]   ;;  %s1551_s7 = inlined_call_operand.vmem [shape: f32[1,128], index: 7, kind: input, shape index: {}]   ;;  %s1552_s8 = inlined_call_operand.vmem [shape: bf16[128,32], index: 8, kind: input, shape index: {}]   ;;  %s1553_s9 = inlined_call_operand.vmem [shape: f32[1,32], index: 9, kind: input, shape index: {}]   ;;  %s1554_s10 = inlined_call_operand.hbm [shape: f32[2,8,32], index: 10, kind: output, shape index: {}]  }
   0x1   :  { %17 = vsyncpa [#allocation3 + $0x1], 0  ;;  %s1310_s13 = smov 0   ;;  %s1312_s14 = smov 0  }
   0x2   :  { %s1314_s15 = smov 0   ;;  %s1316_s16 = smov 0  }
   0x3 LB: > { %s1331_s17 = sadd.s32 4294967295, %s1241_s16   ;;  %s1015_s18 = sadd.s32 4294967294, %s1241_s16   ;;  %s1241_s16 = sphi %s1316_s16, %s1560_s16   ;;  %s1237_s15 = sphi %s1314_s15, %s1559_s15   ;;  %s1233_s14 = sphi %s1312_s14, %s1558_s14   ;;  %s1229_s13 = sphi %s1310_s13, %s1557_s13  }
   0x4   : > { %s1335_s19 = sadd.s32 1, %s1241_s16   ;;  %s250_s20 = sadd.s32 1, %s1237_s15 }
   0x5   : > { %s247_s21 = ssub.s32 %s1241_s16, %s1335_s19  ;;  %p260_p0 = scmp.ne.s32.totalorder %s1237_s15, %s1233_s14 }
   0x6   : > { %p248_p1 = scmp.eq.s32.totalorder %s247_s21, 0  ;;  %p261_p2 = scmp.eq.s32.totalorder %s1331_s17, 1 }
   0x7   : > { %p266_p3 = scmp.ne.s32.totalorder %s1233_s14, %s1229_s13  ;;  %p267_p4 = scmp.eq.s32.totalorder %s1015_s18, 1 }
   0x8   : > { %s1346_s22 = scalar_select %p248_p1, %s1237_s15, %s250_s20  }
   0x9   : > { %p1348_p5 = por %p261_p2, %p260_p0  ;;  %p1352_p6 = por %p267_p4, %p266_p3 }
   0xa   : > { %p1018_p7 = scmp.ge.s32.totalorder %s1241_s16, 1  ;;  %p323_p8 = scmp.lt.s32.totalorder %s1241_s16, 3 }
   0xc   : > { %p324_p9 = pnand %p1018_p7, %p323_p8 }
   0xd   : > { %p364_p10 = scmp.lt.s32.totalorder (!%p324_p9), %s1331_s17, 1  ;;  %s1244_s28 = smov (!%p324_p9), 88  }
   0xe   : > { %327 = sbr.rel (%p324_p9) target bundleno = 2301 (0x8fd), region = 60  ;;  %s1246_s30 = smov (!%p324_p9), 80  }
   0xf   : > { %s1247_s11 = smov (!%p324_p9), 112   ;;  %s1248_s12 = smov (!%p324_p9), 64  }
  0x10   : > { %s1249_s18 = smov (!%p324_p9), 120   ;;  %s1250_s20 = smov (!%p324_p9), 72  }
  0x11   : > { %s1251_s21 = smov (!%p324_p9), 104  }
  0x13   : > { %s1360_s25 = scalar_select %p364_p10, %s1331_s17, 1  ;;  %vm376_vm0 = vcmask 261120   ;;  %v1243_v2 = vmov 32.0   ;;  %v1089_v14 = vld [vmem:[%s1546_s2 + $0x8] sm:$0xff]  ;;  %v1088_v15 = vld [vmem:[%s1546_s2] sm:$0xff]  ;;  %vm457_vm5 = vcmask 64512  }
  0x14   : > { %1155 = vrcp.f32 %v1243_v2  ;;  %440 = vmatpush.bf16.msra.mxu0 %v1089_v14  ;;  %v1151_v34 = vld [vmem:[%s1547_s3] ss:$0 sm:$0xff]  ;;  %vm494_vm6 = vcmask 1043456  }
  0x15   : > { %s1020_s26 = sshll.u32 %s1360_s25, 3  ;;  %v447_v55 = vld [vmem:[%s1548_s4] sm:$0xf] }
  0x16   : > { %s367_s29 = scalar_lea.vmem %s1544_s0, %s1020_s26  ;;  %s371_s27 = scalar_lea.vmem %s1545_s1, %s1020_s26  ;;  %v593_v56 = vsel %vm494_vm6, %v447_v55, 0 }
  0x17   : > { %v1368_v0 = vld [vmem:[%s367_s29] sm:$0xff]  ;;  %s1245_s29 = smov 96   ;;  %602 = vmatpush.bf16.msra.mxu1 %v593_v56  ;;  %s1252_s26 = smov 40  }
  0x18   : > { %v377_v1 = vsel %vm376_vm0, %v1368_v0, 0.0  ;;  %441 = vmatpush.bf16.msra.mxu0 %v1088_v15  ;;  %v1389_v21 = vld [vmem:[%s371_s27] sm:$0x3f] }
  0x19   : > { %378 = vadd.xlane.f32.xlu0 %v377_v1  ;;  %v1392_v24 = vadd.f32 1.0, %v1389_v21  ;;  %v408_v30 = vperm.slane %v1389_v21, 0 }
  0x1a   : > { %v1156_v3 = vpop.eup %1155 }
  0x1b   : > { %v381_v4 = vmul.f32 32.0, %v1156_v3  ;;  %vm385_vm1 = vweird.f32 %v1156_v3  ;;  %v406_v27 = vperm.slane %v1392_v24, 1 }
  0x1d   : > { %v382_v5 = vsub.f32 1.0, %v381_v4 }
  0x1f   : > { %v383_v6 = vmul.f32 %v1156_v3, %v382_v5 }
  0x21   : > { %v384_v7 = vadd.f32 %v1156_v3, %v383_v6 }
  0x23   : > { %v1372_v8 = vsel %vm385_vm1, %v1156_v3, %v384_v7 }
  0x8c   : > { %v379_v9 = vpop.xlane.xlu0 %378 }
  0x8d   : > { %v387_v10 = vmul.f32 %v1372_v8, %v379_v9 }
  0x8f   : > { %v388_v11 = vsub.f32 %v1368_v0, %v387_v10 }
  0x91   : > { %v389_v12 = vmul.f32 %v388_v11, %v388_v11 }
  0x93   : > { %v390_v13 = vsel %vm376_vm0, %v389_v12, 0.0 }
  0x94   : > { %391 = vadd.xlane.f32.xlu0 %v390_v13 }
 0x107   : > { %v392_v16 = vpop.xlane.xlu0 %391 }
 0x108   : > { %v393_v17 = vmul.f32 %v392_v16, %v1372_v8 }
 0x10a   : > { %v394_v18 = vadd.f32 1e-06, %v393_v17 }
 0x10c   : > { %1157 = vrsqrt.f32 %v394_v18  ;;  %vm401_vm3 = vweird.f32 %v394_v18 }
 0x112   : > { %v1158_v19 = vpop.eup %1157 }
 0x113   : > { %v396_v20 = vmul.f32 %v1158_v19, %v394_v18  ;;  %vm402_vm2 = vweird.f32 %v1158_v19 }
 0x114   : > { %vm403_vm4 = vmor %vm401_vm3, %vm402_vm2 }
 0x115   : > { %v397_v22 = vmul.f32 %v1158_v19, %v396_v20 }
 0x117   : > { %v398_v23 = vmul.f32 0.5, %v397_v22 }
 0x119   : > { %v399_v25 = vsub.f32 1.5, %v398_v23 }
 0x11b   : > { %v400_v26 = vmul.f32 %v1158_v19, %v399_v25 }
 0x11d   : > { %v404_v28 = vsel %vm403_vm4, %v1158_v19, %v400_v26 }
 0x11e   : > { %v405_v29 = vmul.f32 %v404_v28, %v388_v11 }
 0x120   : > { %v407_v31 = vmul.f32 %v406_v27, %v405_v29 }
 0x122   : > { %v409_v32 = vadd.f32 %v408_v30, %v407_v31 }
 0x124   : > { %v410_v33 = vpack.c.bf16 %v409_v32, %v409_v32 }
 0x126   : > { %1030 = vmatmul.msk.bf16.vlgmr.msra.gmra.mxu0 %vm376_vm0, %v410_v33 }
 0x1a3   : > { %v443_v35 = vpop.f32.mrf.mxu0 }
 0x1a4   : > { %v444_v36 = vadd.f32 %v1151_v34, %v443_v35 }
 0x1a6   : > { %v1400_v37 = vpack.c.bf16 %v444_v36, %v444_v36  ;;  %v451_v39 = vmul.f32 0.35355338, %v444_v36 }
 0x1a8   : > { %515 = vrot.lane.b32.xlu0 %v1400_v37, %s1244_s28  ;;  %455 = vrot.lane.b32.xlu1 %v1400_v37, %s1245_s29  ;;  %v452_v40 = vpack.c.bf16 %v451_v39, %v451_v39  ;;  %s1253_s28 = smov 56   ;;  %s1254_s29 = smov 48  }
 0x1ab   : > { %v445_v38 = vpop.f32.mrf.mxu0 }
 0x1b0   : > { %610 = vrot.lane.b32.xlu0 %v1400_v37, %s1246_s30 }
 0x1b8   : > { %608 = vrot.lane.b32.xlu0 %v452_v40, %s1247_s11 }
 0x21a   : > { %v516_v41 = vpop.permute.xlu0 %515  ;;  %v456_v42 = vpop.permute.xlu1 %455 }
 0x21b   : > { %v462_v43 = vsel %vm457_vm5, %v456_v42, 0  ;;  %v521_v44 = vsel %vm457_vm5, %v516_v41, 0 }
 0x21c   : > { %471 = vmatpush.bf16.xpose.msra.mxu3 %v462_v43 }
 0x222   : > { %v611_v45 = vpop.permute.xlu0 %610 }
 0x223   : > { %v616_v46 = vsel %vm457_vm5, %v611_v45, 0  ;;  %1031 = vmatmul.msk.bf16.vlgmr.msra.gmra.mxu3 %vm457_vm5, %v452_v40 }
 0x224   : > { %530 = vmatpush.bf16.xpose.msrb.mxu3 %v521_v44 }
 0x22a   : > { %v609_v3 = vpop.permute.xlu0 %608 }
 0x22c   : > { %625 = vmatpush.bf16.xpose.msra.mxu3 %v616_v46 }
 0x2a6   : > { %v473_v47 = vpop.f32.mrf.mxu3 }
 0x2a7   : > { %v477_v48 = vsel %vm457_vm5, %v473_v47, -inf }
 0x2a8   : > { %478 = vmax.xlane.f32.xlu1 %v477_v48 }
 0x2ae   : > { %v475_v49 = vpop.f32.mrf.mxu3 }
 0x31b   : > { %v479_v50 = vpop.xlane.xlu1 %478 }
 0x31c   : > { %v480_v51 = vsub.f32 %v473_v47, %v479_v50 }
 0x31e   : > { %v481_v52 = vmul.f32 1.442695, %v480_v51  ;;  %v448_v51 = vld [vmem:[%s1548_s4 + $0x4] sm:$0xf] }
 0x320   : > { %1159 = vpow2.f32 %v481_v52  ;;  %v574_v52 = vsel %vm494_vm6, %v448_v51, 0  ;;  %v1093_v51 = vld [vmem:[%s1552_s8 + $0x8] sm:$0xff] }
 0x321   : > { %583 = vmatpush.bf16.msrb.mxu0 %v574_v52  ;;  %v1092_v52 = vld [vmem:[%s1552_s8] sm:$0xff] }
 0x326   : > { %v1160_v53 = vpop.eup %1159 }
 0x327   : > { %v483_v54 = vsel %vm457_vm5, %v1160_v53, 0.0 }
 0x328   : > { %484 = vadd.xlane.f32.xlu2 %v483_v54  ;;  %v449_v54 = vld [vmem:[%s1548_s4 + $0x8] sm:$0xf] }
 0x329   : > { %v669_v55 = vsel %vm494_vm6, %v449_v54, 0 }
 0x32a   : > { %678 = vmatpush.bf16.msra.mxu0 %v669_v55 }
 0x340   : > { %489 = vrot.lane.b32.xlu2 %v1400_v37, %s1248_s12  ;;  %s1199_s12 = scalar_lea.hbm %s1554_s10, 16 }
 0x348   : > { %513 = vrot.lane.b32.xlu2 %v452_v40, %s1249_s18 }
 0x350   : > { %687 = vrot.lane.b32.xlu2 %v1400_v37, %s1250_s20 }
 0x358   : > { %685 = vrot.lane.b32.xlu2 %v452_v40, %s1251_s21 }
 0x39b   : > { %v485_v57 = vpop.xlane.xlu2 %484 }
 0x39c   : > { %1161 = vrcp.f32 %v485_v57 }
 0x3a2   : > { %v1162_v58 = vpop.eup %1161 }
 0x3a3   : > { %v490_v59 = vpop.permute.xlu2 %489  ;;  %v487_v60 = vmul.f32 %v1162_v58, %v1160_v53 }
 0x3a4   : > { %v496_v61 = vsel %vm494_vm6, %v490_v59, 0  ;;  %v450_v59 = vld [vmem:[%s1548_s4 + $0xc] sm:$0xf] }
 0x3a5   : > { %505 = vmatpush.bf16.msra.mxu2 %v496_v61  ;;  %v488_v62 = vpack.c.bf16 %v487_v60, %v487_v60  ;;  %v746_v60 = vsel %vm494_vm6, %v450_v59, 0 }
 0x3a8   : > { %1032 = vmatmul.msk.bf16.vlgmr.msra.gmra.mxu2 %vm457_vm5, %v488_v62 }
 0x3ab   : > { %v514_v63 = vpop.permute.xlu2 %513 }
 0x3ac   : > { %1033 = vmatmul.msk.bf16.vlgmr.msrb.gmra.mxu3 %vm457_vm5, %v514_v63 }
 0x3b3   : > { %v688_v1 = vpop.permute.xlu2 %687 }
 0x3b4   : > { %v693_v2 = vsel %vm457_vm5, %v688_v1, 0 }
 0x3b5   : > { %702 = vmatpush.bf16.xpose.msrb.mxu1 %v693_v2 }
 0x3bb   : > { %v686_v11 = vpop.permute.xlu2 %685 }
 0x3bc   : > { %1037 = vmatmul.msk.bf16.vlgmr.msra.gmra.mxu3 %vm457_vm5, %v609_v3 }
 0x42b   : > { %v507_v4 = vpop.f32.mrf.mxu2 }
 0x42c   : > { %v511_v5 = vpack.c.bf16 %v507_v4, %v507_v4 }
 0x42e   : > { %1036 = vmatmul.msk.bf16.vlgmr.msra.gmra.mxu1 %vm457_vm5, %v511_v5 }
 0x42f   : > { %v532_v6 = vpop.f32.mrf.mxu3 }
 0x430   : > { %v536_v7 = vsel %vm457_vm5, %v532_v6, -inf }
 0x431   : > { %537 = vmax.xlane.f32.xlu1 %v536_v7 }
 0x433   : > { %v509_v9 = vpop.f32.mrf.mxu2 }
 0x437   : > { %v534_v10 = vpop.f32.mrf.mxu3 }
 0x43e   : > { %1040 = vmatmul.msk.bf16.vlgmr.msrb.gmra.mxu1 %vm457_vm5, %v686_v11 }
 0x43f   : > { %v627_v12 = vpop.f32.mrf.mxu3 }
 0x440   : > { %v631_v13 = vsel %vm457_vm5, %v627_v12, -inf }
 0x441   : > { %632 = vmax.xlane.f32.xlu2 %v631_v13 }
 0x447   : > { %v629_v14 = vpop.f32.mrf.mxu3 }
 0x448   : > { %v1152_v14 = vld [vmem:[%s1549_s5] ss:$0 sm:$0xff] }
 0x459   : > { %720 = vrot.lane.b32.xlu2 %v1400_v37, %s1252_s26  ;;  %s361_s26 = sand.u32 1, %s1233_s14  }
 0x4a4   : > { %v538_v15 = vpop.xlane.xlu1 %537 }
 0x4a5   : > { %v539_v16 = vsub.f32 %v532_v6, %v538_v15 }
 0x4a7   : > { %v540_v17 = vmul.f32 1.442695, %v539_v16 }
 0x4a9   : > { %1163 = vpow2.f32 %v540_v17  ;;  %v767_v17 = vperm.slane %v1389_v21, 2 }
 0x4ab   : > { %v1427_v18 = vpop.f32.mrf.mxu1 }
 0x4af   : > { %v1164_v19 = vpop.eup %1163 }
 0x4b0   : > { %v542_v20 = vsel %vm457_vm5, %v1164_v19, 0.0 }
 0x4b1   : > { %543 = vadd.xlane.f32.xlu1 %v542_v20 }
 0x4b3   : > { %v606_v22 = vpop.f32.mrf.mxu1 }
 0x4b4   : > { %v633_v23 = vpop.xlane.xlu2 %632 }
 0x4b5   : > { %v634_v25 = vsub.f32 %v627_v12, %v633_v23 }
 0x4b7   : > { %v635_v26 = vmul.f32 1.442695, %v634_v25 }
 0x4b9   : > { %1165 = vpow2.f32 %v635_v26 }
 0x4bb   : > { %v704_v27 = vpop.f32.mrf.mxu1 }
 0x4bc   : > { %v721_v28 = vpop.permute.xlu2 %720  ;;  %v708_v29 = vsel %vm457_vm5, %v704_v27, -inf }
 0x4bd   : > { %v726_v30 = vsel %vm494_vm6, %v721_v28, 0  ;;  %709 = vmax.xlane.f32.xlu0 %v708_v29 }
 0x4be   : > { %735 = vmatpush.bf16.msrb.mxu3 %v726_v30  ;;  %v1091_v30 = vld [vmem:[%s1550_s6 + $0x8] sm:$0xff] }
 0x4bf   : > { %v1166_v31 = vpop.eup %1165 }
 0x4c0   : > { %v637_v33 = vsel %vm457_vm5, %v1166_v31, 0.0 }
 0x4c3   : > { %v706_v32 = vpop.f32.mrf.mxu1 }
 0x4c5   : > { %638 = vadd.xlane.f32.xlu0 %v637_v33 }
 0x4ca   : > { %548 = vrot.lane.b32.xlu1 %v1400_v37, %s1253_s28  ;;  %s1019_s28 = sshll.u32 %s361_s26, 3 }
 0x4cb   : > { %s363_s21 = scalar_lea.vmem [#allocation2], %s1019_s28 }
 0x4cc   : > { %s941_s27 = sshll.u32 %s363_s21, 4  ;;  %s942_s27 = int_to_ptr.vmem [resolvable:$true] %s941_s27 }
 0x4d9   : > { %643 = vrot.lane.b32.xlu0 %v1400_v37, %s1254_s29  ;;  %s1085_s29 = sshll.u32 %s1331_s17, 3  ;;  %s929_s17 = scalar_lea.sflag [#allocation3], %s361_s26 }
 0x4da   : > { %s939_s20 = scalar_lea.hbm %s1554_s10, %s1085_s29 }
 0x4db   : > { %s943_s25 = sshll.u32 %s939_s20, 4  ;;  %s944_s25 = int_to_ptr.hbm [resolvable:$true] %s943_s25 }
 0x4dc   : > { %s1193_s30 = sshra.s32 %s944_s25, 4  ;;  %s1194_s30 = int_to_ptr.hbm [resolvable:$true] %s1193_s30 }
 0x4dd   : > { %s1195_s11 = scalar_lea.hbm %s1194_s30, 8  ;;  %p1200_p0 = scmp.lt.s32.totalorder %s1194_s30, %s1554_s10 }
 0x4de   : > { %p1196_p11 = scmp.ne.s32.totalorder %s1194_s30, %s1195_s11  ;;  %p1201_p1 = scmp.lt.s32.totalorder %s1199_s12, %s1195_s11 }
 0x4e0   : > { %p1197_p12 = pnand %p1196_p11, %p1348_p5  ;;  %p1202_p2 = por %p1201_p1, %p1200_p0 }
 0x4e2   : > { %p1198_p13 = pneg %p1197_p12 }
 0x4e4   : > { %p1203_p3 = pnand %p1202_p2, %p1198_p13 }
 0x524   : > { %v544_v34 = vpop.xlane.xlu1 %543 }
 0x525   : > { %1167 = vrcp.f32 %v544_v34 }
 0x52b   : > { %v1168_v39 = vpop.eup %1167 }
 0x52c   : > { %v546_v41 = vmul.f32 %v1168_v39, %v1164_v19 }
 0x52e   : > { %v547_v46 = vpack.c.bf16 %v546_v41, %v546_v41 }
 0x530   : > { %v710_v35 = vpop.xlane.xlu0 %709 }
 0x531   : > { %v711_v36 = vsub.f32 %v704_v27, %v710_v35 }
 0x533   : > { %v712_v38 = vmul.f32 1.442695, %v711_v36 }
 0x535   : > { %1169 = vpow2.f32 %v712_v38 }
 0x538   : > { %v639_v45 = vpop.xlane.xlu0 %638 }
 0x539   : > { %1171 = vrcp.f32 %v639_v45 }
 0x53b   : > { %v1170_v40 = vpop.eup %1169 }
 0x53c   : > { %v549_v42 = vpop.permute.xlu1 %548  ;;  %v714_v43 = vsel %vm457_vm5, %v1170_v40, 0.0 }
 0x53d   : > { %715 = vadd.xlane.f32.xlu1 %v714_v43  ;;  %v554_v44 = vsel %vm494_vm6, %v549_v42, 0  ;;  %v792_v42 = vperm.slane %v1392_v24, 4  ;;  %v1096_v24 = vld [vmem:[%s1552_s8 + $0x20] sm:$0xff] }
 0x53e   : > { %563 = vmatpush.bf16.msrb.mxu2 %v554_v44  ;;  %v794_v44 = vperm.slane %v1389_v21, 3 }
 0x53f   : > { %v1172_v37 = vpop.eup %1171 }
 0x540   : > { %v641_v47 = vmul.f32 %v1172_v37, %v1166_v31  ;;  %v1099_v31 = vld [vmem:[%s1552_s8 + $0x38] sm:$0xff] }
 0x541   : > { %1034 = vmatmul.msk.bf16.vlgmr.msrb.gmra.mxu2 %vm457_vm5, %v547_v46  ;;  %911 = vmatpush.bf16.msra.mxu1 %v1099_v31 }
 0x542   : > { %v642_v50 = vpack.c.bf16 %v641_v47, %v641_v47  ;;  %v1098_v47 = vld [vmem:[%s1552_s8 + $0x30] sm:$0xff] }
 0x545   : > { %912 = vmatpush.bf16.msra.mxu1 %v1098_v47 }
 0x54b   : > { %v644_v48 = vpop.permute.xlu0 %643 }
 0x54c   : > { %v649_v49 = vsel %vm494_vm6, %v644_v48, 0  ;;  %v1097_v48 = vld [vmem:[%s1552_s8 + $0x28] sm:$0xff] }
 0x54d   : > { %658 = vmatpush.bf16.msra.mxu2 %v649_v49  ;;  %913 = vmatpush.bf16.msra.mxu1 %v1097_v48  ;;  %v1095_v49 = vld [vmem:[%s1552_s8 + $0x18] sm:$0xff] }
 0x551   : > { %1038 = vmatmul.msk.bf16.vlgmr.msra.gmra.mxu2 %vm457_vm5, %v642_v50  ;;  %914 = vmatpush.bf16.msra.mxu1 %v1096_v24  ;;  %v1094_v50 = vld [vmem:[%s1552_s8 + $0x10] sm:$0xff] }
 0x552   : > { %755 = vmatpush.bf16.msrb.mxu2 %v746_v60 }
 0x555   : > { %915 = vmatpush.bf16.msra.mxu1 %v1095_v49 }
 0x559   : > { %916 = vmatpush.bf16.msra.mxu1 %v1094_v50 }
 0x55d   : > { %917 = vmatpush.bf16.msra.mxu1 %v1093_v51 }
 0x561   : > { %918 = vmatpush.bf16.msra.mxu1 %v1092_v52 }
 0x5b0   : > { %v716_v53 = vpop.xlane.xlu1 %715 }
 0x5b1   : > { %1173 = vrcp.f32 %v716_v53  ;;  %v1153_v53 = vld [vmem:[%s1551_s7] ss:$0 sm:$0xff] }
 0x5b7   : > { %v1174_v56 = vpop.eup %1173 }
 0x5b8   : > { %v718_v57 = vmul.f32 %v1174_v56, %v1170_v40 }
 0x5ba   : > { %v719_v58 = vpack.c.bf16 %v718_v57, %v718_v57 }
 0x5bc   : > { %1041 = vmatmul.msk.bf16.vlgmr.msrb.gmra.mxu3 %vm457_vm5, %v719_v58 }
 0x5c4   : > { %v565_v61 = vpop.f32.mrf.mxu2 }
 0x5c5   : > { %v569_v62 = vpack.c.bf16 %v565_v61, %v565_v61 }
 0x5c7   : > { %1035 = vmatmul.msk.bf16.vlgmr.msrb.gmra.mxu0 %vm457_vm5, %v569_v62 }
 0x5c8   : > { %826 = vmatpush.bf16.msrb.mxu0 %v1091_v30 }
 0x5cc   : > { %v567_v63 = vpop.f32.mrf.mxu2 }
 0x5d4   : > { %v660_v1 = vpop.f32.mrf.mxu2 }
 0x5d5   : > { %v664_v2 = vpack.c.bf16 %v660_v1, %v660_v1 }
 0x5d7   : > { %1039 = vmatmul.msk.bf16.vlgmr.msra.gmra.mxu0 %vm457_vm5, %v664_v2 }
 0x5dc   : > { %v662_v3 = vpop.f32.mrf.mxu2 }
 0x63f   : > { %v737_v4 = vpop.f32.mrf.mxu3 }
 0x640   : > { %v741_v5 = vpack.c.bf16 %v737_v4, %v737_v4  ;;  %v1154_v4 = vld [vmem:[%s1553_s9] ss:$0 sm:$0xff] }
 0x642   : > { %1042 = vmatmul.msk.bf16.vlgmr.msrb.gmra.mxu2 %vm457_vm5, %v741_v5  ;;  %v924_v5 = vperm.slane %v1389_v21, 5 }
 0x644   : > { %v585_v6 = vpop.f32.mrf.mxu0 }
 0x645   : > { %v605_v10 = vadd.f32 %v1427_v18, %v585_v6 }
 0x647   : > { %v739_v7 = vpop.f32.mrf.mxu3 }
 0x64c   : > { %v587_v9 = vpop.f32.mrf.mxu0 }
 0x654   : > { %v680_v11 = vpop.f32.mrf.mxu0 }
 0x655   : > { %v684_v12 = vadd.f32 %v680_v11, %v605_v10 }
 0x65c   : > { %v682_v13 = vpop.f32.mrf.mxu0 }
 0x6c5   : > { %v757_v15 = vpop.f32.mrf.mxu2 }
 0x6c6   : > { %v761_v16 = vadd.f32 %v757_v15, %v684_v12 }
 0x6c8   : > { %v766_v19 = vadd.f32 %v1152_v14, %v761_v16 }
 0x6ca   : > { %v768_v20 = vmul.f32 %v767_v17, %v766_v19 }
 0x6cc   : > { %v1462_v22 = vadd.f32 %v768_v20, %v1368_v0  ;;  %v1090_v0 = vld [vmem:[%s1550_s6] sm:$0xff] }
 0x6cd   : > { %v759_v23 = vpop.f32.mrf.mxu2  ;;  %827 = vmatpush.bf16.msrb.mxu0 %v1090_v0 }
 0x6ce   : > { %v770_v18 = vsel %vm376_vm0, %v1462_v22, 0.0 }
 0x6cf   : > { %771 = vadd.xlane.f32.xlu2 %v770_v18 }
 0x742   : > { %v772_v25 = vpop.xlane.xlu2 %771 }
 0x743   : > { %v773_v26 = vmul.f32 %v772_v25, %v1372_v8 }
 0x745   : > { %v774_v27 = vsub.f32 %v1462_v22, %v773_v26 }
 0x747   : > { %v775_v28 = vmul.f32 %v774_v27, %v774_v27 }
 0x749   : > { %v776_v29 = vsel %vm376_vm0, %v775_v28, 0.0 }
 0x74a   : > { %777 = vadd.xlane.f32.xlu0 %v776_v29 }
 0x7bd   : > { %v778_v32 = vpop.xlane.xlu0 %777 }
 0x7be   : > { %v779_v33 = vmul.f32 %v778_v32, %v1372_v8 }
 0x7c0   : > { %v780_v34 = vadd.f32 1e-06, %v779_v33 }
 0x7c2   : > { %1175 = vrsqrt.f32 %v780_v34  ;;  %vm787_vm8 = vweird.f32 %v780_v34 }
 0x7c8   : > { %v1176_v35 = vpop.eup %1175 }
 0x7c9   : > { %v782_v36 = vmul.f32 %v1176_v35, %v780_v34  ;;  %vm788_vm7 = vweird.f32 %v1176_v35 }
 0x7ca   : > { %vm789_vm9 = vmor %vm787_vm8, %vm788_vm7 }
 0x7cb   : > { %v783_v38 = vmul.f32 %v1176_v35, %v782_v36 }
 0x7cd   : > { %v784_v39 = vmul.f32 0.5, %v783_v38 }
 0x7cf   : > { %v785_v40 = vsub.f32 1.5, %v784_v39 }
 0x7d1   : > { %v786_v41 = vmul.f32 %v1176_v35, %v785_v40 }
 0x7d3   : > { %v790_v43 = vsel %vm789_vm9, %v1176_v35, %v786_v41 }
 0x7d4   : > { %v791_v45 = vmul.f32 %v790_v43, %v774_v27 }
 0x7d6   : > { %v793_v46 = vmul.f32 %v792_v42, %v791_v45 }
 0x7d8   : > { %v795_v8 = vadd.f32 %v794_v44, %v793_v46 }
 0x7da   : > { %v796_v37 = vpack.c.bf16 %v795_v8, %v795_v8 }
 0x7dc   : > { %1051 = vmatmul.msk.bf16.vlgmr.msrb.gmra.mxu0 %vm376_vm0, %v796_v37 }
 0x859   : > { %v829_v54 = vpop.f32.mrf.mxu0 }
 0x85a   : > { %v830_v55 = vadd.f32 %v1153_v53, %v829_v54 }
 0x85c   : > { %v833_v56 = vmul.f32 %v830_v55, %v830_v55 }
 0x85e   : > { %v834_v57 = vmul.f32 %v833_v56, %v830_v55 }
 0x860   : > { %v835_v58 = vmul.f32 0.044715, %v834_v57 }
 0x861   : > { %v831_v59 = vpop.f32.mrf.mxu0 }
 0x862   : > { %v836_v60 = vadd.f32 %v835_v58, %v830_v55 }
 0x864   : > { %v837_v61 = vmul.f32 0.7978846, %v836_v60 }
 0x866   : > { %1177 = vtanh.f32 %v837_v61 }
 0x86c   : > { %v1178_v62 = vpop.eup %1177 }
 0x86d   : > { %v839_v63 = vadd.f32 1.0, %v1178_v62 }
 0x86f   : > { %v840_v1 = vmul.f32 0.5, %v839_v63 }
 0x871   : > { %v841_v2 = vmul.f32 %v840_v1, %v830_v55 }
 0x873   : > { %v842_v3 = vpack.c.bf16 %v841_v2, %v841_v2 }
 0x875   : > { %919 = vmatmul.bf16.vlgmr.msra.gmra.mxu1 %v842_v3 }
 0x8f2   : > { %v920_v6 = vpop.f32.mrf.mxu1 }
 0x8f3   : > { %v921_v7 = vadd.f32 %v1154_v4, %v920_v6 }
 0x8f5   : > { %v925_v9 = vmul.f32 %v924_v5, %v921_v7 }
 0x8f7   : > { %v926_v10 = vadd.f32 %v925_v9, %v1462_v22 }
 0x8f9   : > { %927 = vst.msk [vmem:[%s363_s21] sm:$0xff] %vm376_vm0, %v926_v10 }
 0x8fa   : > { %v922_v11 = vpop.f32.mrf.mxu1 }
 0x8fb   : > { %1206 = shalt.err (!%p1203_p3)
}
 0x8fc   : > { %1100 = dma.vmem_to_hbm [thread:$0]  (%p1348_p5), %s942_s27, 128, %s944_s25, %s929_s17  }
 0x8fd PF: > { %p1106_p4 = scmp.ge.s32.totalorder %s1241_s16, 2  ;;  %s955_s26 = sand.u32 1, %s1229_s13  }
 0x8fe   : > { %s956_s21 = scalar_lea.sflag [#allocation3], %s955_s26 }
 0x8ff   : > { %p1103_p7 = pnand %p1106_p4, %p1352_p6 }
 0x901   : > { %p1104_p8 = pneg %p1103_p7 }
 0x903   : > { %1224 = dma.done.wait (%p1104_p8), %s956_s21, 128  }
 0x904   : > { %1226 = vsyncadd (%p1104_p8), %s956_s21, 4294967168  ;;  %p20_p9 = scmp.ge.s32.totalorder %s1335_s19, 4   ;;  %s1557_s13 = smov %s1233_s14 }
 0x905   : > { %s1558_s14 = smov %s1237_s15  ;;  %s1559_s15 = smov %s1346_s22 }
 0x906   : > { %s1560_s16 = smov %s1335_s19  ;;  %22 = sbr.rel (!%p20_p9) target bundleno = 3 (0x3), region = 98 }
 0x90b   :  { %962 = vsyncpa [#allocation3], 1 }
 0x90c   :  { %964 = vsyncpa [#allocation3 + $0x1], 1 }

</bundles_post_ra>
